<compile_context>
chip_gen: v6e
topology: v6e:2x2x1
jax: 0.10.0
libtpu: 0.0.40
codegen_flags: <defaults>
</compile_context>

<pallas_src>
import functools

import numpy as np
import jax
import jax.numpy as jnp
from jax.experimental import pallas as pl
from jax.experimental.pallas import tpu as pltpu

INPUT_SIZE = 96                      # word-vector size
EDGE_SIZE = 32                       # edge-vector size
D = INPUT_SIZE + EDGE_SIZE           # 128  (lane-aligned fused input)
HIDDEN_SIZE = 32                     # H
GATES = 4 * HIDDEN_SIZE              # 128  fused gate width: [i | o | u | f]
STATE_W = 128                        # state row layout: [c (H) | h (H) | pad]
N_MAX = 8                            # max children per node (padded)


# ----------------------------------------------------------------------------
# Pallas kernel: whole-tree ChildSum-TreeLSTM forward in ONE kernel invocation.
# ----------------------------------------------------------------------------
def tree_lstm_kernel(tok_ref, cidx_ref,                       # scalar prefetch (SMEM)
                     x_ref, wx_ref, bx_ref, wh_ref, bh_ref,   # VMEM inputs
                     state_ref,                               # VMEM output
                     xp_ref,                                  # VMEM scratch
                     *, num_nodes):
    H = HIDDEN_SIZE

    # Zero the whole state table once; the last row is the dedicated zero row
    # that padded child slots point at (it is never written).
    state_ref[...] = jnp.zeros_like(state_ref)

    # x-side projections for ALL tokens in one batched matmul (hoisted out of
    # the node loop): (seq_pad, D) @ (D, 4H) + bias.
    xp_ref[...] = (jnp.dot(x_ref[...], wx_ref[...],
                           preferred_element_type=jnp.float32) + bx_ref[...])

    # Hoist loop-invariant loads / constants.
    wh = wh_ref[...]                                          # (H, 4H)
    bh = bh_ref[...]                                          # (1, 4H)
    zero_tail = jnp.zeros((1, STATE_W - 2 * H), jnp.float32)

    @pl.loop(0, num_nodes)
    def _(n):
        # ---- x-side row (already projected) ---------------------------------
        tok = tok_ref[n]
        xp = xp_ref[pl.ds(tok, 1), :]                         # (1, 4H)

        # ---- gather children's (c, h) rows from the resident state table ----
        rows = []
        for j in range(N_MAX):                                # static unroll
            idx = cidx_ref[n * N_MAX + j]                     # child topo pos (or zero row)
            rows.append(state_ref[pl.ds(idx, 1), :])          # (1, STATE_W)
        gathered = jnp.concatenate(rows, axis=0)              # (N_MAX, STATE_W) = 1 vreg
        child_c = gathered[:, 0:H]                            # (N_MAX, H)
        child_h = gathered[:, H:2 * H]                        # (N_MAX, H)

        # ---- h-side: one fused (N_MAX,32)@(32,128) matmul --------------------
        hp = jnp.dot(child_h, wh, preferred_element_type=jnp.float32) + bh

        # iou = ioux(x) + iouh(sum child_h); sum moved after the matmul
        # (biases bioux+biouh pre-folded into bx, bh has zeros in iou slice).
        iou = xp[:, :3 * H] + jnp.sum(hp[:, :3 * H], axis=0, keepdims=True)
        i = jax.nn.sigmoid(iou[:, 0:H])
        o = jax.nn.sigmoid(iou[:, H:2 * H])
        u = jnp.tanh(iou[:, 2 * H:3 * H])

        # forget gates, one per child: f = sigmoid(fh(child_h) + fx(x))
        fx = xp[:, 3 * H:4 * H]                               # (1, H)
        f = jax.nn.sigmoid(hp[:, 3 * H:4 * H] + fx)           # (N_MAX, H)
        fc = f * child_c                                      # padded rows -> 0 (c == 0)

        c = i * u + jnp.sum(fc, axis=0, keepdims=True)        # (1, H)
        h = o * jnp.tanh(c)                                   # (1, H)

        # Lane-dense 128-wide row store: [c | h | zeros]
        state_ref[pl.ds(n, 1), :] = jnp.concatenate([c, h, zero_tail], axis=-1)


# ----------------------------------------------------------------------------
# Parameter handling (PyTorch Linear semantics: y = x @ W^T + b; we store W^T).
# ----------------------------------------------------------------------------
def init_params(key):
    ks = jax.random.split(key, 8)
    s = 0.1
    wioux = s * jax.random.normal(ks[0], (D, 3 * HIDDEN_SIZE), jnp.float32)
    bioux = s * jax.random.normal(ks[1], (3 * HIDDEN_SIZE,), jnp.float32)
    wiouh = s * jax.random.normal(ks[2], (HIDDEN_SIZE, 3 * HIDDEN_SIZE), jnp.float32)
    biouh = s * jax.random.normal(ks[3], (3 * HIDDEN_SIZE,), jnp.float32)
    wfx = s * jax.random.normal(ks[4], (D, HIDDEN_SIZE), jnp.float32)
    bfx = s * jax.random.normal(ks[5], (HIDDEN_SIZE,), jnp.float32)
    wfh = s * jax.random.normal(ks[6], (HIDDEN_SIZE, HIDDEN_SIZE), jnp.float32)
    bfh = s * jax.random.normal(ks[7], (HIDDEN_SIZE,), jnp.float32)
    return (wioux, bioux, wiouh, biouh, wfx, bfx, wfh, bfh)


def fuse_params(params):
    """One-time algebraic fusion: [ioux|fx] on the x side, [iouh|fh] on the h side."""
    wioux, bioux, wiouh, biouh, wfx, bfx, wfh, bfh = params
    wx = jnp.concatenate([wioux, wfx], axis=1)                        # (D, 4H)
    bx = jnp.concatenate([bioux + biouh, bfx], axis=0)[None, :]       # (1, 4H)
    wh = jnp.concatenate([wiouh, wfh], axis=1)                        # (H, 4H)
    bh = jnp.concatenate(
        [jnp.zeros((3 * HIDDEN_SIZE,), jnp.float32), bfh], axis=0)[None, :]  # (1, 4H)
    return wx, bx, wh, bh


# ----------------------------------------------------------------------------
# pallas_call wrapper.
# ----------------------------------------------------------------------------
def _round_up(x, m):
    return (x + m - 1) // m * m


def make_tree_lstm(params, num_nodes, seq_len):
    wx, bx, wh, bh = fuse_params(params)
    nnodes_pad = _round_up(num_nodes + 1, 8)        # +1: dedicated always-zero row
    seq_pad = _round_up(seq_len, 8)

    const2d = lambda i, *_: (0, 0)                  # everything VMEM-resident

    call = pl.pallas_call(
        functools.partial(tree_lstm_kernel, num_nodes=num_nodes),
        out_shape=jax.ShapeDtypeStruct((nnodes_pad, STATE_W), jnp.float32),
        grid_spec=pltpu.PrefetchScalarGridSpec(
            num_scalar_prefetch=2,                  # tok, child_idx (flat)
            grid=(1,),
            in_specs=[
                pl.BlockSpec((seq_pad, D), const2d),          # fused word+edge inputs
                pl.BlockSpec((D, GATES), const2d),            # Wx = [wioux | wfx]
                pl.BlockSpec((1, GATES), const2d),            # bx = [bioux+biouh | bfx]
                pl.BlockSpec((HIDDEN_SIZE, GATES), const2d),  # Wh = [wiouh | wfh]
                pl.BlockSpec((1, GATES), const2d),            # bh = [0 | bfh]
            ],
            out_specs=pl.BlockSpec((nnodes_pad, STATE_W), const2d),
            scratch_shapes=[pltpu.VMEM((seq_pad, GATES), jnp.float32)],
        ),
        compiler_params=pltpu.CompilerParams(
            dimension_semantics=("arbitrary",)),
    )

    @jax.jit
    def run(tok, cidx_flat, x_full):
        x_pad = jnp.pad(x_full, ((0, seq_pad - seq_len), (0, 0)))
        return call(tok, cidx_flat, x_pad, wx, bx, wh, bh)

    return run, nnodes_pad


# ----------------------------------------------------------------------------
# Host-side tree structure + topology extraction (one-time, per tree).
# ----------------------------------------------------------------------------
class Tree:
    def __init__(self, idx, children=()):
        self.idx = idx
        self.children = list(children)
        self.num_children = len(self.children)
        self.state = None
        self.topo = None


def topo_order(tree):
    order = []

    def rec(node):
        for ch in node.children:
            rec(ch)
        node.topo = len(order)
        order.append(node)

    rec(tree)
    return order


def build_topology_arrays(nodes, zero_row):
    num_nodes = len(nodes)
    tok = np.zeros((num_nodes,), np.int32)
    # padded child slots point at the always-zero state row -> no mask needed
    cidx = np.full((num_nodes, N_MAX), zero_row, np.int32)
    for p, nd in enumerate(nodes):
        tok[p] = nd.idx
        for j, ch in enumerate(nd.children):
            cidx[p, j] = ch.topo
    return jnp.asarray(tok), jnp.asarray(cidx.reshape(-1))


# ----------------------------------------------------------------------------
# Pure-JAX reference (mirrors the PyTorch forward / node_forward exactly).
# ----------------------------------------------------------------------------
def node_forward_ref(params, x_row, child_c, child_h):
    wioux, bioux, wiouh, biouh, wfx, bfx, wfh, bfh = params
    H = HIDDEN_SIZE
    child_h_sum = jnp.sum(child_h, axis=0, keepdims=True)
    iou = (x_row @ wioux + bioux) + (child_h_sum @ wiouh + biouh)
    i = jax.nn.sigmoid(iou[:, :H])
    o = jax.nn.sigmoid(iou[:, H:2 * H])
    u = jnp.tanh(iou[:, 2 * H:])
    f = jax.nn.sigmoid((child_h @ wfh + bfh) + (x_row @ wfx + bfx))
    fc = f * child_c
    c = i * u + jnp.sum(fc, axis=0, keepdims=True)
    h = o * jnp.tanh(c)
    return c, h


def tree_forward_ref(params, tree, x_full):
    for child in tree.children:
        tree_forward_ref(params, child, x_full)
    if tree.num_children == 0:
        child_c = jnp.zeros((1, HIDDEN_SIZE), jnp.float32)
        child_h = jnp.zeros((1, HIDDEN_SIZE), jnp.float32)
    else:
        child_c = jnp.concatenate([c.state[0] for c in tree.children], axis=0)
        child_h = jnp.concatenate([c.state[1] for c in tree.children], axis=0)
    x_row = x_full[tree.idx][None, :]
    tree.state = node_forward_ref(params, x_row, child_c, child_h)
    return tree.state


# ----------------------------------------------------------------------------
if __name__ == "__main__":
    key = jax.random.PRNGKey(0)
    pkey, wkey, ekey = jax.random.split(key, 3)
    params = init_params(pkey)

    seq_len = 8
    word = jax.random.normal(wkey, (seq_len, INPUT_SIZE), jnp.float32)
    edge = jax.random.normal(ekey, (seq_len, EDGE_SIZE), jnp.float32)
    # seqs = cat(inputs[idx], edge_inputs[idx]) for every node, done once.
    x_full = jnp.concatenate([word, edge], axis=-1)            # (seq_len, D)

    # small dependency tree over 8 tokens:
    #        0
    #      / | \
    #     1  2  5
    #    /|     |\
    #   3 4     6 7
    def build_tree():
        return Tree(0, [
            Tree(1, [Tree(3), Tree(4)]),
            Tree(2),
            Tree(5, [Tree(6), Tree(7)]),
        ])

    tree = build_tree()
    nodes = topo_order(tree)
    num_nodes = len(nodes)
    assert all(nd.num_children <= N_MAX for nd in nodes)

    run, nnodes_pad = make_tree_lstm(params, num_nodes, seq_len)
    tok, cidx_flat = build_topology_arrays(nodes, zero_row=nnodes_pad - 1)

    state = jax.block_until_ready(run(tok, cidx_flat, x_full))

    H = HIDDEN_SIZE
    root_p = tree.topo
    c = state[root_p:root_p + 1, :H]
    h = state[root_p:root_p + 1, H:2 * H]

    # Reference (variable-length child lists, recursive, like the torch module).
    tree_ref = build_tree()
    c_ref, h_ref = tree_forward_ref(params, tree_ref, x_full)
    ref_nodes = topo_order(tree_ref)

    assert c.shape == (1, H) and h.shape == (1, H)
    assert jnp.allclose(c, c_ref, atol=1e-5, rtol=1e-5), "root c mismatch vs reference"
    assert jnp.allclose(h, h_ref, atol=1e-5, rtol=1e-5), "root h mismatch vs reference"
    for p, nd in enumerate(ref_nodes):
        cr, hr = nd.state
        assert jnp.allclose(state[p:p + 1, :H], cr, atol=1e-5, rtol=1e-5), f"node {p} c mismatch"
        assert jnp.allclose(state[p:p + 1, H:2 * H], hr, atol=1e-5, rtol=1e-5), f"node {p} h mismatch"

    print("KERNEL_OK")
</pallas_src>

<mosaic_0001>
module attributes {stable_mosaic.version = 11 : i64} {
  func.func @tree_lstm_kernel(%arg0: i32, %arg1: memref<8xi32, #tpu.memory_space<smem>>, %arg2: memref<64xi32, #tpu.memory_space<smem>>, %arg3: memref<8x128xf32, #tpu.memory_space<vmem>>, %arg4: memref<128x128xf32, #tpu.memory_space<vmem>>, %arg5: memref<1x128xf32, #tpu.memory_space<vmem>>, %arg6: memref<32x128xf32, #tpu.memory_space<vmem>>, %arg7: memref<1x128xf32, #tpu.memory_space<vmem>>, %arg8: memref<16x128xf32, #tpu.memory_space<vmem>>, %arg9: memref<8x128xf32, #tpu.memory_space<vmem>>) attributes {dimension_semantics = [#tpu.dimension_semantics<arbitrary>], iteration_bounds = array<i64: 1>, scalar_prefetch = 2 : i64, scratch_operands = 1 : i64, tpu.core_type = #tpu.core_type<tc>, window_params = [{pipeline_mode = #tpu.pipeline_mode<synchronous>, transform_indices = @transform_0, window_bounds = array<i64: 8, 128>}, {pipeline_mode = #tpu.pipeline_mode<synchronous>, transform_indices = @transform_1, window_bounds = array<i64: 128, 128>}, {pipeline_mode = #tpu.pipeline_mode<synchronous>, transform_indices = @transform_2, window_bounds = array<i64: 1, 128>}, {pipeline_mode = #tpu.pipeline_mode<synchronous>, transform_indices = @transform_3, window_bounds = array<i64: 32, 128>}, {pipeline_mode = #tpu.pipeline_mode<synchronous>, transform_indices = @transform_4, window_bounds = array<i64: 1, 128>}, {pipeline_mode = #tpu.pipeline_mode<synchronous>, transform_indices = @transform_5, window_bounds = array<i64: 16, 128>}]} {
    %cst = arith.constant 0.000000e+00 : f32
    %0 = vector.broadcast %cst : f32 to vector<16x128xf32>
    %c0 = arith.constant 0 : index
    %c0_0 = arith.constant 0 : index
    %1 = vector.load %arg8[%c0, %c0_0] : memref<16x128xf32, #tpu.memory_space<vmem>>, vector<16x128xf32>
    tpu.vector_store %arg8[%c0, %c0_0], %0 {strides = array<i32>} : memref<16x128xf32, #tpu.memory_space<vmem>>, vector<16x128xf32>,
    %c0_1 = arith.constant 0 : index
    %c0_2 = arith.constant 0 : index
    %2 = vector.load %arg3[%c0_1, %c0_2] : memref<8x128xf32, #tpu.memory_space<vmem>>, vector<8x128xf32>
    %c0_3 = arith.constant 0 : index
    %c0_4 = arith.constant 0 : index
    %3 = vector.load %arg4[%c0_3, %c0_4] : memref<128x128xf32, #tpu.memory_space<vmem>>, vector<128x128xf32>
    %cst_5 = arith.constant dense<0.000000e+00> : vector<8x128xf32>
    %4 = tpu.matmul %2, %3, %cst_5 {dimension_numbers = #tpu.dot_dimension_numbers<[1], [0], [0], [1], [0, 0, 1, 1], [], []>} : vector<8x128xf32>, vector<128x128xf32>, vector<8x128xf32> -> vector<8x128xf32>
    %c0_6 = arith.constant 0 : index
    %c0_7 = arith.constant 0 : index
    %5 = vector.load %arg5[%c0_6, %c0_7] : memref<1x128xf32, #tpu.memory_space<vmem>>, vector<1x128xf32>
    %6 = vector.broadcast %5 : vector<1x128xf32> to vector<8x128xf32>
    %7 = arith.addf %4, %6 : vector<8x128xf32>
    %c0_8 = arith.constant 0 : index
    %c0_9 = arith.constant 0 : index
    %8 = vector.load %arg9[%c0_8, %c0_9] : memref<8x128xf32, #tpu.memory_space<vmem>>, vector<8x128xf32>
    tpu.vector_store %arg9[%c0_8, %c0_9], %7 {strides = array<i32>} : memref<8x128xf32, #tpu.memory_space<vmem>>, vector<8x128xf32>,
    %c0_10 = arith.constant 0 : index
    %c0_11 = arith.constant 0 : index
    %9 = vector.load %arg6[%c0_10, %c0_11] : memref<32x128xf32, #tpu.memory_space<vmem>>, vector<32x128xf32>
    %c0_12 = arith.constant 0 : index
    %c0_13 = arith.constant 0 : index
    %10 = vector.load %arg7[%c0_12, %c0_13] : memref<1x128xf32, #tpu.memory_space<vmem>>, vector<1x128xf32>
    %cst_14 = arith.constant 0.000000e+00 : f32
    %11 = vector.broadcast %cst_14 : f32 to vector<1x64xf32>
    %c0_i32 = arith.constant 0 : i32
    %c8_i32 = arith.constant 8 : i32
    %12 = arith.addi %c0_i32, %c8_i32 : i32
    %c1_i32 = arith.constant 1 : i32
    scf.for %arg10 = %c0_i32 to %12 step %c1_i32  : i32 {
      %c1_i32_16 = arith.constant 1 : i32
      %13 = arith.muli %arg10, %c1_i32_16 : i32
      %c0_i32_17 = arith.constant 0 : i32
      %14 = arith.addi %c0_i32_17, %13 : i32
      %15 = arith.index_cast %14 : i32 to index
      %16 = memref.load %arg1[%15] : memref<8xi32, #tpu.memory_space<smem>>
      %17 = arith.index_cast %16 : i32 to index
      %c0_18 = arith.constant 0 : index
      %18 = vector.load %arg9[%17, %c0_18] : memref<8x128xf32, #tpu.memory_space<vmem>>, vector<1x128xf32>
      %c8_i32_19 = arith.constant 8 : i32
      %19 = arith.muli %14, %c8_i32_19 : i32
      %c0_i32_20 = arith.constant 0 : i32
      %20 = arith.addi %19, %c0_i32_20 : i32
      %21 = arith.index_cast %20 : i32 to index
      %22 = memref.load %arg2[%21] : memref<64xi32, #tpu.memory_space<smem>>
      %23 = arith.index_cast %22 : i32 to index
      %c0_21 = arith.constant 0 : index
      %24 = vector.load %arg8[%23, %c0_21] : memref<16x128xf32, #tpu.memory_space<vmem>>, vector<1x128xf32>
      %c8_i32_22 = arith.constant 8 : i32
      %25 = arith.muli %14, %c8_i32_22 : i32
      %c1_i32_23 = arith.constant 1 : i32
      %26 = arith.addi %25, %c1_i32_23 : i32
      %27 = arith.index_cast %26 : i32 to index
      %28 = memref.load %arg2[%27] : memref<64xi32, #tpu.memory_space<smem>>
      %29 = arith.index_cast %28 : i32 to index
      %c0_24 = arith.constant 0 : index
      %30 = vector.load %arg8[%29, %c0_24] : memref<16x128xf32, #tpu.memory_space<vmem>>, vector<1x128xf32>
      %c8_i32_25 = arith.constant 8 : i32
      %31 = arith.muli %14, %c8_i32_25 : i32
      %c2_i32 = arith.constant 2 : i32
      %32 = arith.addi %31, %c2_i32 : i32
      %33 = arith.index_cast %32 : i32 to index
      %34 = memref.load %arg2[%33] : memref<64xi32, #tpu.memory_space<smem>>
      %35 = arith.index_cast %34 : i32 to index
      %c0_26 = arith.constant 0 : index
      %36 = vector.load %arg8[%35, %c0_26] : memref<16x128xf32, #tpu.memory_space<vmem>>, vector<1x128xf32>
      %c8_i32_27 = arith.constant 8 : i32
      %37 = arith.muli %14, %c8_i32_27 : i32
      %c3_i32 = arith.constant 3 : i32
      %38 = arith.addi %37, %c3_i32 : i32
      %39 = arith.index_cast %38 : i32 to index
      %40 = memref.load %arg2[%39] : memref<64xi32, #tpu.memory_space<smem>>
      %41 = arith.index_cast %40 : i32 to index
      %c0_28 = arith.constant 0 : index
      %42 = vector.load %arg8[%41, %c0_28] : memref<16x128xf32, #tpu.memory_space<vmem>>, vector<1x128xf32>
      %c8_i32_29 = arith.constant 8 : i32
      %43 = arith.muli %14, %c8_i32_29 : i32
      %c4_i32 = arith.constant 4 : i32
      %44 = arith.addi %43, %c4_i32 : i32
      %45 = arith.index_cast %44 : i32 to index
      %46 = memref.load %arg2[%45] : memref<64xi32, #tpu.memory_space<smem>>
      %47 = arith.index_cast %46 : i32 to index
      %c0_30 = arith.constant 0 : index
      %48 = vector.load %arg8[%47, %c0_30] : memref<16x128xf32, #tpu.memory_space<vmem>>, vector<1x128xf32>
      %c8_i32_31 = arith.constant 8 : i32
      %49 = arith.muli %14, %c8_i32_31 : i32
      %c5_i32 = arith.constant 5 : i32
      %50 = arith.addi %49, %c5_i32 : i32
      %51 = arith.index_cast %50 : i32 to index
      %52 = memref.load %arg2[%51] : memref<64xi32, #tpu.memory_space<smem>>
      %53 = arith.index_cast %52 : i32 to index
      %c0_32 = arith.constant 0 : index
      %54 = vector.load %arg8[%53, %c0_32] : memref<16x128xf32, #tpu.memory_space<vmem>>, vector<1x128xf32>
      %c8_i32_33 = arith.constant 8 : i32
      %55 = arith.muli %14, %c8_i32_33 : i32
      %c6_i32 = arith.constant 6 : i32
      %56 = arith.addi %55, %c6_i32 : i32
      %57 = arith.index_cast %56 : i32 to index
      %58 = memref.load %arg2[%57] : memref<64xi32, #tpu.memory_space<smem>>
      %59 = arith.index_cast %58 : i32 to index
      %c0_34 = arith.constant 0 : index
      %60 = vector.load %arg8[%59, %c0_34] : memref<16x128xf32, #tpu.memory_space<vmem>>, vector<1x128xf32>
      %c8_i32_35 = arith.constant 8 : i32
      %61 = arith.muli %14, %c8_i32_35 : i32
      %c7_i32 = arith.constant 7 : i32
      %62 = arith.addi %61, %c7_i32 : i32
      %63 = arith.index_cast %62 : i32 to index
      %64 = memref.load %arg2[%63] : memref<64xi32, #tpu.memory_space<smem>>
      %65 = arith.index_cast %64 : i32 to index
      %c0_36 = arith.constant 0 : index
      %66 = vector.load %arg8[%65, %c0_36] : memref<16x128xf32, #tpu.memory_space<vmem>>, vector<1x128xf32>
      %67 = tpu.concatenate %24, %30, %36, %42, %48, %54, %60, %66 in 0 : vector<1x128xf32>, vector<1x128xf32>, vector<1x128xf32>, vector<1x128xf32>, vector<1x128xf32>, vector<1x128xf32>, vector<1x128xf32>, vector<1x128xf32> -> vector<8x128xf32>
      %68 = vector.extract_strided_slice %67 {offsets = [0, 0], sizes = [8, 32], strides = [1, 1]} : vector<8x128xf32> to vector<8x32xf32>
      %69 = vector.extract_strided_slice %67 {offsets = [0, 32], sizes = [8, 32], strides = [1, 1]} : vector<8x128xf32> to vector<8x32xf32>
      %cst_37 = arith.constant dense<0.000000e+00> : vector<8x128xf32>
      %70 = tpu.matmul %69, %9, %cst_37 {dimension_numbers = #tpu.dot_dimension_numbers<[1], [0], [0], [1], [0, 0, 1, 1], [], []>} : vector<8x32xf32>, vector<32x128xf32>, vector<8x128xf32> -> vector<8x128xf32>
      %71 = vector.broadcast %10 : vector<1x128xf32> to vector<8x128xf32>
      %72 = arith.addf %70, %71 : vector<8x128xf32>
      %73 = vector.extract_strided_slice %18 {offsets = [0, 0], sizes = [1, 96], strides = [1, 1]} : vector<1x128xf32> to vector<1x96xf32>
      %74 = vector.extract_strided_slice %72 {offsets = [0, 0], sizes = [8, 96], strides = [1, 1]} : vector<8x128xf32> to vector<8x96xf32>
      %cst_38 = arith.constant dense<0.000000e+00> : vector<96xf32>
      %75 = vector.multi_reduction <add>, %74, %cst_38 [0] : vector<8x96xf32> to vector<96xf32>
      %76 = vector.shape_cast %75 : vector<96xf32> to vector<1x96xf32>
      %77 = arith.addf %73, %76 : vector<1x96xf32>
      %78 = vector.extract_strided_slice %77 {offsets = [0, 0], sizes = [1, 32], strides = [1, 1]} : vector<1x96xf32> to vector<1x32xf32>
      %79 = arith.negf %78 : vector<1x32xf32>
      %80 = math.exp %79 : vector<1x32xf32>
      %cst_39 = arith.constant 1.000000e+00 : f32
      %81 = vector.broadcast %cst_39 : f32 to vector<1x32xf32>
      %82 = arith.addf %81, %80 : vector<1x32xf32>
      %83 = arith.divf %81, %82 : vector<1x32xf32>
      %84 = vector.extract_strided_slice %77 {offsets = [0, 32], sizes = [1, 32], strides = [1, 1]} : vector<1x96xf32> to vector<1x32xf32>
      %85 = arith.negf %84 : vector<1x32xf32>
      %86 = math.exp %85 : vector<1x32xf32>
      %cst_40 = arith.constant 1.000000e+00 : f32
      %87 = vector.broadcast %cst_40 : f32 to vector<1x32xf32>
      %88 = arith.addf %87, %86 : vector<1x32xf32>
      %89 = arith.divf %87, %88 : vector<1x32xf32>
      %90 = vector.extract_strided_slice %77 {offsets = [0, 64], sizes = [1, 32], strides = [1, 1]} : vector<1x96xf32> to vector<1x32xf32>
      %91 = math.tanh %90 : vector<1x32xf32>
      %92 = vector.extract_strided_slice %18 {offsets = [0, 96], sizes = [1, 32], strides = [1, 1]} : vector<1x128xf32> to vector<1x32xf32>
      %93 = vector.extract_strided_slice %72 {offsets = [0, 96], sizes = [8, 32], strides = [1, 1]} : vector<8x128xf32> to vector<8x32xf32>
      %94 = vector.broadcast %92 : vector<1x32xf32> to vector<8x32xf32>
      %95 = arith.addf %93, %94 : vector<8x32xf32>
      %96 = arith.negf %95 : vector<8x32xf32>
      %97 = math.exp %96 : vector<8x32xf32>
      %cst_41 = arith.constant 1.000000e+00 : f32
      %98 = vector.broadcast %cst_41 : f32 to vector<8x32xf32>
      %99 = arith.addf %98, %97 : vector<8x32xf32>
      %100 = arith.divf %98, %99 : vector<8x32xf32>
      %101 = arith.mulf %100, %68 : vector<8x32xf32>
      %102 = arith.mulf %83, %91 : vector<1x32xf32>
      %cst_42 = arith.constant dense<0.000000e+00> : vector<32xf32>
      %103 = vector.multi_reduction <add>, %101, %cst_42 [0] : vector<8x32xf32> to vector<32xf32>
      %104 = vector.shape_cast %103 : vector<32xf32> to vector<1x32xf32>
      %105 = arith.addf %102, %104 : vector<1x32xf32>
      %106 = math.tanh %105 : vector<1x32xf32>
      %107 = arith.mulf %89, %106 : vector<1x32xf32>
      %108 = tpu.concatenate %105, %107, %11 in 1 : vector<1x32xf32>, vector<1x32xf32>, vector<1x64xf32> -> vector<1x128xf32>
      %109 = arith.index_cast %14 : i32 to index
      %c0_43 = arith.constant 0 : index
      %110 = vector.load %arg8[%109, %c0_43] : memref<16x128xf32, #tpu.memory_space<vmem>>, vector<1x128xf32>
      tpu.vector_store %arg8[%109, %c0_43], %108 {strides = array<i32>} : memref<16x128xf32, #tpu.memory_space<vmem>>, vector<1x128xf32>,
    }
    %c8_i32_15 = arith.constant 8 : i32
    return
  }
  func.func @transform_0(%arg0: i32, %arg1: memref<8xi32, #tpu.memory_space<smem>>, %arg2: memref<64xi32, #tpu.memory_space<smem>>) -> (i32, i32) {
    %c0_i32 = arith.constant 0 : i32
    %c0_i32_0 = arith.constant 0 : i32
    %c0_i32_1 = arith.constant 0 : i32
    return %c0_i32, %c0_i32_0 : i32, i32
  }
  func.func @transform_1(%arg0: i32, %arg1: memref<8xi32, #tpu.memory_space<smem>>, %arg2: memref<64xi32, #tpu.memory_space<smem>>) -> (i32, i32) {
    %c0_i32 = arith.constant 0 : i32
    %c0_i32_0 = arith.constant 0 : i32
    %c0_i32_1 = arith.constant 0 : i32
    return %c0_i32, %c0_i32_0 : i32, i32
  }
  func.func @transform_2(%arg0: i32, %arg1: memref<8xi32, #tpu.memory_space<smem>>, %arg2: memref<64xi32, #tpu.memory_space<smem>>) -> (i32, i32) {
    %c0_i32 = arith.constant 0 : i32
    %c0_i32_0 = arith.constant 0 : i32
    %c0_i32_1 = arith.constant 0 : i32
    return %c0_i32, %c0_i32_0 : i32, i32
  }
  func.func @transform_3(%arg0: i32, %arg1: memref<8xi32, #tpu.memory_space<smem>>, %arg2: memref<64xi32, #tpu.memory_space<smem>>) -> (i32, i32) {
    %c0_i32 = arith.constant 0 : i32
    %c0_i32_0 = arith.constant 0 : i32
    %c0_i32_1 = arith.constant 0 : i32
    return %c0_i32, %c0_i32_0 : i32, i32
  }
  func.func @transform_4(%arg0: i32, %arg1: memref<8xi32, #tpu.memory_space<smem>>, %arg2: memref<64xi32, #tpu.memory_space<smem>>) -> (i32, i32) {
    %c0_i32 = arith.constant 0 : i32
    %c0_i32_0 = arith.constant 0 : i32
    %c0_i32_1 = arith.constant 0 : i32
    return %c0_i32, %c0_i32_0 : i32, i32
  }
  func.func @transform_5(%arg0: i32, %arg1: memref<8xi32, #tpu.memory_space<smem>>, %arg2: memref<64xi32, #tpu.memory_space<smem>>) -> (i32, i32) {
    %c0_i32 = arith.constant 0 : i32
    %c0_i32_0 = arith.constant 0 : i32
    %c0_i32_1 = arith.constant 0 : i32
    return %c0_i32, %c0_i32_0 : i32, i32
  }
}

</mosaic_0001>

<bundles_post_ra>
// kernel: run.1
= control target key start
LH: loop header
LB: loop body
LE: loop exit
PB: predicated region body
PF: predicated region fallthrough
CT: control target
= control target key end

     0   :  { %s646_s24 = smov [#allocation4]   ;;  %s773_s0 = inlined_call_operand.hbm [shape: s32[8], index: 0, kind: input, shape index: {}]   ;;  %s774_s2 = inlined_call_operand.hbm [shape: f32[8,128], index: 2, kind: input, shape index: {}]   ;;  %s775_s3 = inlined_call_operand.hbm [shape: f32[128,128], index: 3, kind: input, shape index: {}]   ;;  %s776_s4 = inlined_call_operand.vmem [shape: f32[1,128], index: 4, kind: input, shape index: {}]   ;;  %s777_s5 = inlined_call_operand.hbm [shape: f32[32,128], index: 5, kind: input, shape index: {}]   ;;  %s778_s6 = inlined_call_operand.vmem [shape: f32[1,128], index: 6, kind: input, shape index: {}]   ;;  %s779_s7 = inlined_call_operand.hbm [shape: f32[16,128], index: 7, kind: output, shape index: {}]   ;;  %s780_s1 = inlined_call_operand.vmem [shape: s32[64], index: 1, kind: input, shape index: {}]  }
   0x1   :  { %13 = dma.hbm_to_smem %s773_s0, 16, %s646_s24, [#allocation3] }
   0x2   :  { %s14_s29 = sshll.u32 %s780_s1, 4  ;;  %s15_s29 = int_to_ptr.vmem [resolvable:$true] %s14_s29 }
   0x3   :  { %s538_s30 = scalar_lea.vmem %s15_s29, 16  ;;  %p543_p1 = scmp.lt.s32.totalorder %s15_s29, %s15_s29 }
   0x4   :  { %p539_p0 = scmp.ne.s32.totalorder %s15_s29, %s538_s30  ;;  %p544_p2 = scmp.lt.s32.totalorder %s538_s30, %s538_s30 }
   0x6   :  { %p545_p3 = por %p544_p2, %p543_p1 }
   0x8   :  { %p546_p4 = pnand %p545_p3, %p539_p0 }
   0xa   :  { %549 = shalt.err (!%p546_p4)  }
   0xb   :  { %s647_s8 = smov [#allocation5]  }
   0xc   :  { %17 = dma.vmem_to_smem %s15_s29, 16, %s647_s8, [#allocation3] }
   0xd   :  { %634 = dma.done.wait [#allocation3], 32 }
   0xe   :  { %635 = vsyncadd [#allocation3], 4294967264 }
   0xf   :  { %19 = sfence }
  0x10   :  { %20 = vsyncpa [#allocation7], 0 }
  0x11   :  { %21 = vsyncpa [#allocation10], 0 }
  0x12   :  { %22 = vsyncpa [#allocation8], 0  ;;  %s648_s0 = smov [#allocation9]  }
  0x13   :  { %s38_s9 = sshll.u32 %s648_s0, 4  ;;  %s39_s9 = int_to_ptr.vmem [resolvable:$true] %s38_s9 }
  0x14   :  { %s558_s1 = scalar_lea.vmem %s39_s9, 2048  ;;  %p563_p6 = scmp.lt.s32.totalorder %s39_s9, %s39_s9 }
  0x15   :  { %p559_p5 = scmp.ne.s32.totalorder %s39_s9, %s558_s1  ;;  %p564_p7 = scmp.lt.s32.totalorder %s558_s1, %s558_s1 }
  0x17   :  { %p565_p8 = por %p564_p7, %p563_p6 }
  0x19   :  { %p566_p9 = pnand %p565_p8, %p559_p5 }
  0x1b   :  { %569 = shalt.err (!%p566_p9)
}
  0x1c   :  { %s649_s10 = smov 128   ;;  %s650_s11 = smov 8  }
  0x1d   :  { %44 = dma.hbm_to_vmem [thread:$0]  %s775_s3, 2048, %s39_s9, [#allocation10], %s649_s10, %s649_s10, %s650_s11  }
  0x1e   :  { %s651_s14 = smov [#allocation6]   ;;  %s652_s16 = smov [#allocation11]  }
  0x1f   :  { %s29_s15 = sshll.u32 %s651_s14, 4  ;;  %s52_s17 = sshll.u32 %s652_s16, 4  ;;  %s30_s15 = int_to_ptr.vmem [resolvable:$true] %s29_s15  ;;  %s53_s17 = int_to_ptr.vmem [resolvable:$true] %s52_s17 }
  0x20   :  { %s578_s18 = scalar_lea.vmem %s30_s15, 128  ;;  %p583_p11 = scmp.lt.s32.totalorder %s30_s15, %s30_s15 }
  0x21   :  { %p579_p10 = scmp.ne.s32.totalorder %s30_s15, %s578_s18  ;;  %p584_p12 = scmp.lt.s32.totalorder %s578_s18, %s578_s18 }
  0x23   :  { %p585_p13 = por %p584_p12, %p583_p11 }
  0x25   :  { %p586_p0 = pnand %p585_p13, %p579_p10 }
  0x27   :  { %589 = shalt.err (!%p586_p0)
}
  0x28   :  { %32 = dma.hbm_to_vmem [thread:$0]  %s774_s2, 128, %s30_s15, [#allocation7]  }
  0x29   :  { %s598_s21 = scalar_lea.vmem %s53_s17, 512  ;;  %p603_p2 = scmp.lt.s32.totalorder %s53_s17, %s53_s17 }
  0x2a   :  { %p599_p1 = scmp.ne.s32.totalorder %s53_s17, %s598_s21  ;;  %p604_p3 = scmp.lt.s32.totalorder %s598_s21, %s598_s21 }
  0x2c   :  { %p605_p4 = por %p604_p3, %p603_p2 }
  0x2e   :  { %p606_p5 = pnand %p605_p4, %p599_p1 }
  0x30   :  { %609 = shalt.err (!%p606_p5)
}
  0x31   :  { %58 = dma.hbm_to_vmem [thread:$0]  %s777_s5, 512, %s53_s17, [#allocation10], %s649_s10, %s649_s10, %s650_s11  }
  0x32   :  { %636 = dma.done.wait [#allocation7], 128  }
  0x33   :  { %637 = vsyncadd [#allocation7], 4294967168 }
  0x34   :  { %638 = dma.done.wait [#allocation10], 2560  }
  0x35   :  { %639 = vsyncadd [#allocation10], 4294964736  ;;  %v653_v0 = vmov 0.0   ;;  %vm654_vm0 = vmmov 0   ;;  %v722_v1 = vld [vmem:[#allocation11] sm:$0xff]  ;;  %v724_v2 = vld [vmem:[#allocation11 + $0x8] sm:$0xff] }
  0x36   :  { %70 = vst [vmem:[#allocation12] sm:$0xff] %v653_v0  ;;  %71 = vst [vmem:[#allocation12 + $0x8] sm:$0xff] %v653_v0  ;;  %449 = vmatprep.subr.mxu0 %v653_v0  ;;  %481 = vmatprep.mubr.msk.f32.mxu0 %vm654_vm0, %v653_v0  ;;  %v726_v3 = vld [vmem:[#allocation11 + $0x10] sm:$0xff]  ;;  %v728_v4 = vld [vmem:[#allocation11 + $0x18] sm:$0xff]  ;;  %s738_s24 = smov 0  }
  0x37   :  { %v733_v5 = vld [vmem:[%s778_s6] ss:$0 sm:$0xff]  ;;  %v88_v6 = vld [vmem:[#allocation9 + $0x78] sm:$0xff]  ;;  %v86_v8 = vld [vmem:[#allocation9 + $0x68] sm:$0xff] }
  0x38   :  { %450 = vmatpush3.msra.mxu0 %v88_v6  ;;  %v87_v7 = vld [vmem:[#allocation9 + $0x70] sm:$0xff]  ;;  %v85_v9 = vld [vmem:[#allocation9 + $0x60] sm:$0xff]  ;;  %v84_v10 = vld [vmem:[#allocation9 + $0x58] sm:$0xff] }
  0x39   :  { %451 = vmatprep.subr.mxu0 %v653_v0  ;;  %v83_v11 = vld [vmem:[#allocation9 + $0x50] sm:$0xff]  ;;  %v82_v12 = vld [vmem:[#allocation9 + $0x48] sm:$0xff]  ;;  %v81_v13 = vld [vmem:[#allocation9 + $0x40] sm:$0xff] }
  0x3a   :  { %452 = vmatpush3.msra.mxu0 %v87_v7  ;;  %v80_v14 = vld [vmem:[#allocation9 + $0x38] sm:$0xff]  ;;  %v79_v15 = vld [vmem:[#allocation9 + $0x30] sm:$0xff]  ;;  %v78_v16 = vld [vmem:[#allocation9 + $0x28] sm:$0xff] }
  0x3b   :  { %453 = vmatprep.subr.mxu0 %v653_v0  ;;  %v77_v17 = vld [vmem:[#allocation9 + $0x20] sm:$0xff]  ;;  %v76_v18 = vld [vmem:[#allocation9 + $0x18] sm:$0xff]  ;;  %v75_v19 = vld [vmem:[#allocation9 + $0x10] sm:$0xff] }
  0x3c   :  { %454 = vmatpush3.msra.mxu0 %v86_v8  ;;  %v74_v20 = vld [vmem:[#allocation9 + $0x8] sm:$0xff]  ;;  %v73_v21 = vld [vmem:[#allocation9] sm:$0xff]  ;;  %v72_v22 = vld [vmem:[#allocation6] sm:$0xff] }
  0x3d   :  { %455 = vmatprep.subr.mxu0 %v653_v0  ;;  %v421_v23 = vld [vmem:[%s776_s4] ss:$0 sm:$0xff] }
  0x3e   :  { %456 = vmatpush3.msra.mxu0 %v85_v9 }
  0x3f   :  { %457 = vmatprep.subr.mxu0 %v653_v0 }
  0x40   :  { %458 = vmatpush3.msra.mxu0 %v84_v10 }
  0x41   :  { %459 = vmatprep.subr.mxu0 %v653_v0 }
  0x42   :  { %460 = vmatpush3.msra.mxu0 %v83_v11 }
  0x43   :  { %461 = vmatprep.subr.mxu0 %v653_v0 }
  0x44   :  { %462 = vmatpush3.msra.mxu0 %v82_v12 }
  0x45   :  { %463 = vmatprep.subr.mxu0 %v653_v0 }
  0x46   :  { %464 = vmatpush3.msra.mxu0 %v81_v13 }
  0x47   :  { %465 = vmatprep.subr.mxu0 %v653_v0 }
  0x48   :  { %466 = vmatpush3.msra.mxu0 %v80_v14 }
  0x49   :  { %467 = vmatprep.subr.mxu0 %v653_v0 }
  0x4a   :  { %468 = vmatpush3.msra.mxu0 %v79_v15 }
  0x4b   :  { %469 = vmatprep.subr.mxu0 %v653_v0 }
  0x4c   :  { %470 = vmatpush3.msra.mxu0 %v78_v16 }
  0x4d   :  { %471 = vmatprep.subr.mxu0 %v653_v0 }
  0x4e   :  { %472 = vmatpush3.msra.mxu0 %v77_v17 }
  0x4f   :  { %473 = vmatprep.subr.mxu0 %v653_v0 }
  0x50   :  { %474 = vmatpush3.msra.mxu0 %v76_v18 }
  0x51   :  { %475 = vmatprep.subr.mxu0 %v653_v0 }
  0x52   :  { %476 = vmatpush3.msra.mxu0 %v75_v19 }
  0x53   :  { %477 = vmatprep.subr.mxu0 %v653_v0 }
  0x54   :  { %478 = vmatpush3.msra.mxu0 %v74_v20 }
  0x55   :  { %479 = vmatprep.subr.mxu0 %v653_v0 }
  0x56   :  { %480 = vmatpush3.msra.mxu0 %v73_v21 }
  0x57   :  { %482 = vmatmul.mubr.f32.vlgmr.msra.gmra.mxu0 %v72_v22 }
 0x117   :  { %v162_v24 = vpop.f32.mrf.mxu0 }
 0x118   :  { %v163_v25 = vadd.f32 %v421_v23, %v162_v24 }
 0x119   :  { %v483_v26 = vpop.f32.mrf.mxu0 }
 0x11a   :  { %166 = vst [vmem:[#allocation2] sm:$0xff] %v163_v25 }
 0x11b LB: > { %s744_s25 = sshll.u32 %s644_s24, 3  ;;  %v655_v27 = vmov 0.0   ;;  %vm656_vm1 = vmmov 0   ;;  %vm234_vm2 = vcmask 1040384   ;;  %vm236_vm3 = vcmask 1041408   ;;  %s657_s5 = smov 96   ;;  %s644_s24 = sphi %s738_s24, %s177_s24  }
 0x11c   : > { %484 = vmatprep.subr.mxu0 %v655_v27  ;;  %s182_s4 = sld [smem:[#allocation5 + %s744_s25]]  ;;  %s185_s26 = sadd.s32 1, %s744_s25  ;;  %492 = vmatprep.mubr.msk.f32.mxu0 %vm656_vm1, %v655_v27  ;;  %vm238_vm4 = vcmask 1042432   ;;  %vm240_vm5 = vcmask 1043456   ;;  %vm242_vm6 = vcmask 1044480   ;;  %vm244_vm7 = vcmask 1045504  }
 0x11d   : > { %485 = vmatpush3.msra.mxu0 %v728_v4  ;;  %s186_s27 = sld [smem:[#allocation5 + %s185_s26]]  ;;  %s189_s28 = sadd.s32 2, %s744_s25  ;;  %vm246_vm8 = vcmask 1046528   ;;  %vm257_vm9 = vcmask 261120   ;;  %v346_v51 = vlaneseq  ;;  %vm330_vm10 = vcmask 785408  }
 0x11e   : > { %486 = vmatprep.subr.mxu0 %v655_v27  ;;  %s190_s29 = sld [smem:[#allocation5 + %s189_s28]]  ;;  %s193_s30 = sadd.s32 3, %s744_s25  ;;  %vm364_vm11 = vcmask 1048320   ;;  %vm384_vm12 = vcmask 523264  }
 0x11f   : > { %487 = vmatpush3.msra.mxu0 %v726_v3  ;;  %s194_s8 = sld [smem:[#allocation5 + %s193_s30]]  ;;  %s197_s0 = sadd.s32 4, %s744_s25  ;;  %v347_v52 = vshrl.u32 %v346_v51, 7 }
 0x120   : > { %488 = vmatprep.subr.mxu0 %v655_v27  ;;  %s198_s9 = sld [smem:[#allocation5 + %s197_s0]]  ;;  %s201_s1 = sadd.s32 5, %s744_s25 }
 0x121   : > { %489 = vmatpush3.msra.mxu0 %v724_v2  ;;  %s202_s12 = sld [smem:[#allocation5 + %s201_s1]]  ;;  %s205_s13 = sadd.s32 6, %s744_s25  ;;  %v348_v53 = vsub.s32 0, %v347_v52 }
 0x122   : > { %490 = vmatprep.subr.mxu0 %v655_v27  ;;  %s206_s14 = sld [smem:[#allocation5 + %s205_s13]]  ;;  %s209_s15 = sadd.s32 7, %s744_s25 }
 0x123   : > { %491 = vmatpush3.msra.mxu0 %v722_v1  ;;  %s183_s16 = scalar_lea.vmem [#allocation12], %s182_s4  ;;  %s187_s17 = scalar_lea.vmem [#allocation12], %s186_s27 }
 0x124   : > { %v184_v28 = vld [vmem:[%s183_s16] sm:$0x1]  ;;  %s210_s18 = sld [smem:[#allocation5 + %s209_s15]]  ;;  %s191_s19 = scalar_lea.vmem [#allocation12], %s190_s29 }
 0x125   : > { %v188_v29 = vld [vmem:[%s187_s17] sm:$0x1]  ;;  %s195_s20 = scalar_lea.vmem [#allocation12], %s194_s8  ;;  %s178_s6 = sld [smem:[#allocation4 + %s644_s24]] }
 0x126   : > { %v192_v30 = vld [vmem:[%s191_s19] sm:$0x1]  ;;  %v214_v31 = vrot.slane %v188_v29, 7  ;;  %s199_s21 = scalar_lea.vmem [#allocation12], %s198_s9  ;;  %s658_s25 = smov 64  }
 0x127   : > { %v196_v32 = vld [vmem:[%s195_s20] sm:$0x1]  ;;  %v217_v33 = vrot.slane %v192_v30, 6  ;;  %s203_s3 = scalar_lea.vmem [#allocation12], %s202_s12  ;;  %s659_s4 = smov 32  }
 0x128   : > { %v200_v34 = vld [vmem:[%s199_s21] sm:$0x1]  ;;  %v220_v35 = vrot.slane %v196_v32, 5  ;;  %v235_v36 = vsel %vm234_vm2, %v184_v28, %v214_v31  ;;  %s207_s22 = scalar_lea.vmem [#allocation12], %s206_s14  ;;  %s386_s26 = scalar_lea.vmem [#allocation12], %s644_s24 }
 0x129   : > { %v204_v37 = vld [vmem:[%s203_s3] sm:$0x1]  ;;  %v223_v38 = vrot.slane %v200_v34, 4  ;;  %v237_v39 = vsel %vm236_vm3, %v235_v36, %v217_v33  ;;  %s177_s24 = sadd.s32 1, %s644_s24  }
 0x12a   : > { %v208_v40 = vld [vmem:[%s207_s22] sm:$0x1]  ;;  %v226_v41 = vrot.slane %v204_v37, 3  ;;  %v239_v42 = vsel %vm238_vm4, %v237_v39, %v220_v35  ;;  %s211_s2 = scalar_lea.vmem [#allocation12], %s210_s18  ;;  %p174_p6 = scmp.ge.s32.totalorder %s177_s24, 8  }
 0x12b   : > { %v229_v43 = vrot.slane %v208_v40, 2  ;;  %v241_v44 = vsel %vm240_vm5, %v239_v42, %v223_v38  ;;  %v212_v45 = vld [vmem:[%s211_s2] sm:$0x1]  ;;  %s179_s23 = scalar_lea.vmem [#allocation2], %s178_s6  ;;  %s660_s27 = smov (%p174_p6), [#allocation12]  }
 0x12c   : > { %v243_v46 = vsel %vm242_vm6, %v241_v44, %v226_v41  ;;  %v232_v47 = vrot.slane %v212_v45, 1  ;;  %v180_v54 = vld [vmem:[%s179_s23] sm:$0x1]  ;;  %s393_s28 = sshll.u32 (%p174_p6), %s660_s27, 4  ;;  %s394_s28 = int_to_ptr.vmem [resolvable:$true] %s393_s28 }
 0x12d   : > { %v245_v48 = vsel %vm244_vm7, %v243_v46, %v229_v43  ;;  %v349_v55 = vrot.slane %v180_v54, %v348_v53  ;;  %s610_s29 = scalar_lea.vmem (%p174_p6), %s394_s28, 256  ;;  %p615_p8 = scmp.lt.s32.totalorder (%p174_p6), %s394_s28, %s394_s28 }
 0x12e   : > { %v247_v49 = vsel %vm246_vm8, %v245_v48, %v232_v47  ;;  %p611_p7 = scmp.ne.s32.totalorder (%p174_p6), %s394_s28, %s610_s29  ;;  %p616_p9 = scmp.lt.s32.totalorder (%p174_p6), %s610_s29, %s610_s29 }
 0x12f   : > { %255 = vrot.lane.b32.xlu0 %v247_v49, %s657_s5 }
 0x130   :  { %p617_p10 = por (%p174_p6), %p616_p9, %p615_p8 }
 0x132   :  { %p618_p11 = pnand (%p174_p6), %p617_p10, %p611_p7 }
 0x1a1   : > { %v256_v50 = vpop.permute.xlu0 %255 }
 0x1a2   : > { %493 = vmatmul.mubr.msk.f32.vlgmr.msra.gmra.mxu0 %vm257_vm9, %v256_v50 }
 0x262   : > { %v326_v56 = vpop.f32.mrf.mxu0 }
 0x263   : > { %v327_v57 = vadd.f32 %v733_v5, %v326_v56 }
 0x264   : > { %v494_v58 = vpop.f32.mrf.mxu0 }
 0x265   : > { %v331_v59 = vsel %vm330_vm10, %v327_v57, 0.0  ;;  %v350_v60 = vadd.f32 %v349_v55, %v327_v57 }
 0x266   : > { %v332_v61 = vrot.slane %v331_v59, 4 }
 0x267   : > { %v426_v62 = vmul.f32 -1.442695, %v350_v60 }
 0x268   : > { %v333_v63 = vadd.f32 %v332_v61, %v331_v59 }
 0x269   : > { %518 = vpow2.f32 %v426_v62 }
 0x26a   : > { %v334_v0 = vrot.slane %v333_v63, 2 }
 0x26c   : > { %v335_v6 = vadd.f32 %v334_v0, %v333_v63 }
 0x26e   : > { %v336_v7 = vrot.slane %v335_v6, 1 }
 0x270   : > { %v337_v8 = vadd.f32 %v336_v7, %v335_v6 }
 0x272   : > { %v338_v9 = vadd.f32 %v337_v8, %v180_v54 }
 0x274   : > { %520 = vtanh.f32 %v338_v9  ;;  %v425_v22 = vmul.f32 -1.442695, %v338_v9 }
 0x276   : > { %v519_v10 = vpop.eup %518 }
 0x277   : > { %v354_v11 = vadd.f32 1.0, %v519_v10 }
 0x279   : > { %522 = vrcp.f32 %v354_v11 }
 0x27a   : > { %524 = vpow2.f32 %v425_v22 }
 0x281   : > { %v521_v12 = vpop.eup %520 }
 0x282   : > { %360 = vrot.lane.b32.xlu0 %v521_v12, %s658_s25 }
 0x286   : > { %v523_v13 = vpop.eup %522 }
 0x287   : > { %v358_v14 = vmul.f32 %v523_v13, %v256_v50  ;;  %v525_v23 = vpop.eup %524 }
 0x288   : > { %v342_v24 = vadd.f32 1.0, %v525_v23 }
 0x289   : > { %v365_v15 = vsel %vm364_vm11, %v358_v14, 0.0 }
 0x28a   : > { %v366_v16 = vrot.slane %v365_v15, 4  ;;  %526 = vrcp.f32 %v342_v24 }
 0x28c   : > { %v367_v17 = vadd.f32 %v366_v16, %v365_v15 }
 0x28e   : > { %v368_v18 = vrot.slane %v367_v17, 2 }
 0x290   : > { %v369_v19 = vadd.f32 %v368_v18, %v367_v17 }
 0x292   : > { %v370_v20 = vrot.slane %v369_v19, 1 }
 0x294   : > { %v371_v21 = vadd.f32 %v370_v20, %v369_v19 }
 0x296   : > { %373 = vrot.lane.b32.xlu1 %v371_v21, %s659_s4 }
 0x297   : > { %v527_v26 = vpop.eup %526 }
 0x2f4   : > { %v361_v25 = vpop.permute.xlu0 %360 }
 0x2f5   : > { %v363_v27 = vmul.f32 %v527_v26, %v361_v25 }
 0x308   : > { %v374_v28 = vpop.permute.xlu1 %373 }
 0x309   : > { %v376_v29 = vadd.f32 %v374_v28, %v363_v27 }
 0x30b   : > { %528 = vtanh.f32 %v376_v29 }
 0x318   : > { %v529_v30 = vpop.eup %528 }
 0x319   : > { %379 = vrot.lane.b32.xlu1 %v529_v30, %s659_s4 }
 0x38b   : > { %v380_v31 = vpop.permute.xlu1 %379 }
 0x38c   : > { %v382_v32 = vmul.f32 %v527_v26, %v380_v31  ;;  %176 = sbr.rel (!%p174_p6) target bundleno = 283 (0x11b), region = 69 }
 0x38e   : > { %v383_v33 = vsel %vm257_vm9, %v376_v29, %v382_v32 }
 0x38f   : > { %v385_v34 = vsel %vm384_vm12, %v383_v33, 0.0 }
 0x390   : > { %387 = vst [vmem:[%s386_s26] sm:$0x1] %v385_v34 }
 0x391   :  { %621 = shalt.err (!%p618_p11)
}
 0x392   :  { %399 = dma.vmem_to_hbm [thread:$0]  %s394_s28, 256, %s779_s7, [#allocation8], %s649_s10, %s649_s10, %s650_s11  }
 0x393   :  { %640 = dma.done.wait [#allocation8], 256  }
 0x394   :  { %641 = vsyncadd [#allocation8], 4294967040 }
 0x395   :  { %403 = vsyncpa [#allocation7], 1 }
 0x396   :  { %404 = vsyncpa [#allocation10], 1 }
 0x397   :  { %405 = vsyncpa [#allocation8], 1 }

</bundles_post_ra>
